<compile_context>
chip_gen: v5e
topology: v5e:2x2
jax: 0.10.0
libtpu: 0.0.40
codegen_flags: <defaults>
</compile_context>

<pallas_src>
import jax
import jax.numpy as jnp
from jax.experimental import pallas as pl
from jax.experimental.pallas import tpu as pltpu


def _round_up(x, m):
    return ((x + m - 1) // m) * m


# ----------------------------------------------------------------------------
# Single fused kernel: standardize + 4 block-structured GEMMs + fused heads
# ----------------------------------------------------------------------------
def _fused_policy_kernel(obs_ref, smalls_ref, w1x_ref, w1a_ref, w2_ref,
                         whead_ref, out_ref):
    Din = obs_ref.shape[1]          # A*O
    AH = w2_ref.shape[0]            # A*H
    Nout = out_ref.shape[1]         # A*act + A

    obs = obs_ref[...]                                   # (br, Din) f32
    mean = smalls_ref[0:1, :Din]                         # (1, Din)
    inv_std = smalls_ref[1:2, :Din]                      # (1, Din)
    b1 = smalls_ref[2:3, :AH]                            # (1, AH)
    b2 = smalls_ref[3:4, :AH]                            # (1, AH)
    bh = smalls_ref[4:5, :Nout]                          # (1, Nout)

    # fused standardization: (obs - mean) * inv_std, nan/±inf -> 0
    x = (obs - mean) * inv_std
    x = jnp.where(jnp.isfinite(x), x, jnp.zeros_like(x))

    # layer 1: shared-x part (tiled W1x) + per-agent part (block-scattered W1a)
    h1_pre = (
        jnp.dot(x.astype(jnp.bfloat16), w1x_ref[...],
                preferred_element_type=jnp.float32)
        + jnp.dot(obs.astype(jnp.bfloat16), w1a_ref[...],
                  preferred_element_type=jnp.float32)
        + b1)                                            # (br, AH)
    h1 = jnp.tanh(h1_pre)

    # layer 2: block-diagonal W2
    h2 = jnp.tanh(
        jnp.dot(h1.astype(jnp.bfloat16), w2_ref[...],
                preferred_element_type=jnp.float32) + b2)  # (br, AH)

    # fused policy + value heads -> single output slab [logits | values]
    out_ref[...] = (
        jnp.dot(h2.astype(jnp.bfloat16), whead_ref[...],
                preferred_element_type=jnp.float32) + bh)  # (br, Nout)


def fused_policy_forward(obs2d, params, block_rows=256):
    """obs2d: (B, A*O) raw flattened obs. Returns (B, A*act + A) slab."""
    B, Din = obs2d.shape
    AH = params["w2"].shape[0]
    Nout = params["whead"].shape[1]
    sm_shape = params["smalls"].shape

    br = min(block_rows, _round_up(B, 8))
    br = _round_up(br, 8)
    Bp = _round_up(B, br)
    if Bp != B:
        obs2d = jnp.pad(obs2d, ((0, Bp - B), (0, 0)))

    out = pl.pallas_call(
        _fused_policy_kernel,
        out_shape=jax.ShapeDtypeStruct((Bp, Nout), jnp.float32),
        grid_spec=pl.GridSpec(
            grid=(Bp // br,),
            in_specs=[
                pl.BlockSpec((br, Din), lambda i: (i, 0)),         # obs stream
                pl.BlockSpec(sm_shape, lambda i: (0, 0)),          # packed smalls
                pl.BlockSpec((Din, AH), lambda i: (0, 0)),         # W1x_big
                pl.BlockSpec((Din, AH), lambda i: (0, 0)),         # W1a_big
                pl.BlockSpec((AH, AH), lambda i: (0, 0)),          # W2_big
                pl.BlockSpec((AH, Nout), lambda i: (0, 0)),        # Whead_big
            ],
            out_specs=pl.BlockSpec((br, Nout), lambda i: (i, 0)),
        ),
        compiler_params=pltpu.CompilerParams(
            dimension_semantics=("parallel",)),
    )(obs2d, params["smalls"], params["w1x"], params["w1a"],
      params["w2"], params["whead"])

    return out[:B] if Bp != B else out


# ----------------------------------------------------------------------------
# Module wrapper (only cheap lane slices; layouts already final)
# ----------------------------------------------------------------------------
def policy_joippo_forward(obs_flat, params, n_agents, obs_size, act_dim,
                          block_rows=256):
    A = n_agents
    out = fused_policy_forward(obs_flat, params, block_rows)   # (B, A*act + A)
    logits = out[:, :A * act_dim]        # (B, A*act) == torch.cat(logits, dim=1)
    values = out[:, A * act_dim:]        # (B, A)     == torch.stack(values, dim=1)
    return logits, values


# ----------------------------------------------------------------------------
# Deterministic synthetic parameters (packed block-structured weights)
# ----------------------------------------------------------------------------
def init_params(key, n_agents, obs_size, core_hidden_dim, act_dim):
    A, O, H = n_agents, obs_size, core_hidden_dim
    Din = A * O
    AH = A * H
    Nout = A * act_dim + A
    ks = jax.random.split(key, 12)

    mean = jax.random.normal(ks[0], (A, O), jnp.float32)
    std = jnp.abs(jax.random.normal(ks[1], (A, O), jnp.float32)) + 0.5
    inv_std = 1.0 / std

    # base (per-agent-shared) weights, mirroring the single torch core_network
    w1 = jax.random.normal(ks[2], (Din + O, H), jnp.float32)   # concat(x, af_i)
    b1 = jax.random.normal(ks[4], (H,), jnp.float32)
    w2 = jax.random.normal(ks[5], (H, H), jnp.float32)
    b2 = jax.random.normal(ks[6], (H,), jnp.float32)
    wp = 0.01 * jax.random.normal(ks[7], (H, act_dim), jnp.float32)
    bp = 0.01 * jax.random.normal(ks[8], (act_dim,), jnp.float32)
    wv = 0.01 * jax.random.normal(ks[9], (H, 1), jnp.float32)
    bv = 0.01 * jax.random.normal(ks[10], (1,), jnp.float32)

    w1x, w1a = w1[:Din], w1[Din:]

    # shared-x part: same W1x feeds every agent's column block
    w1x_big = jnp.tile(w1x, (1, A))                            # (Din, AH)

    # per-agent part: agent i's raw obs rows feed only agent i's column block
    w1a_big = jnp.zeros((Din, AH), jnp.float32)
    for i in range(A):
        w1a_big = w1a_big.at[i * O:(i + 1) * O, i * H:(i + 1) * H].set(w1a)

    # block-diagonal layer-2 weight
    w2_big = jnp.zeros((AH, AH), jnp.float32)
    for i in range(A):
        w2_big = w2_big.at[i * H:(i + 1) * H, i * H:(i + 1) * H].set(w2)

    # fused heads: [block-diag Wp | per-agent Wv columns]
    whead_big = jnp.zeros((AH, Nout), jnp.float32)
    for i in range(A):
        whead_big = whead_big.at[i * H:(i + 1) * H,
                                 i * act_dim:(i + 1) * act_dim].set(wp)
        whead_big = whead_big.at[i * H:(i + 1) * H,
                                 A * act_dim + i].set(wv[:, 0])

    bhead = jnp.concatenate([jnp.tile(bp, A), jnp.tile(bv, A)])  # (Nout,)

    # packed small-parameter slab: [mean | inv_std | b1_big | b2_big | bhead]
    W = max(128, Din, AH, Nout)
    smalls = jnp.zeros((5, W), jnp.float32)
    smalls = smalls.at[0, :Din].set(mean.reshape(-1))
    smalls = smalls.at[1, :Din].set(inv_std.reshape(-1))
    smalls = smalls.at[2, :AH].set(jnp.tile(b1, A))
    smalls = smalls.at[3, :AH].set(jnp.tile(b2, A))
    smalls = smalls.at[4, :Nout].set(bhead)

    params = {
        "smalls": smalls,                                  # f32 (5, 128)
        "w1x": w1x_big.astype(jnp.bfloat16),               # (Din, AH)
        "w1a": w1a_big.astype(jnp.bfloat16),               # (Din, AH)
        "w2": w2_big.astype(jnp.bfloat16),                 # (AH, AH)
        "whead": whead_big.astype(jnp.bfloat16),           # (AH, Nout)
    }
    raw = {"mean": mean, "std": std, "w1": w1, "b1": b1, "w2": w2, "b2": b2,
           "wp": wp, "bp": bp, "wv": wv, "bv": bv}
    return params, raw


# ----------------------------------------------------------------------------
# Pure-JAX reference (mirrors the PyTorch per-agent loop, f32 HIGHEST)
# ----------------------------------------------------------------------------
def reference_forward(obs_flat, raw, n_agents, obs_size):
    hi = jax.lax.Precision.HIGHEST
    B = obs_flat.shape[0]
    A, O = n_agents, obs_size
    obs = obs_flat.reshape(B, A, O)
    std_obs = (obs - raw["mean"]) / raw["std"]
    std_obs = jnp.where(jnp.isfinite(std_obs), std_obs, 0.0)
    x = std_obs.reshape(B, A * O)
    logits_list, values_list = [], []
    for i in range(A):
        inp = jnp.concatenate([x, obs[:, i, :]], axis=1)
        h1 = jnp.tanh(jnp.dot(inp, raw["w1"], precision=hi) + raw["b1"])
        h2 = jnp.tanh(jnp.dot(h1, raw["w2"], precision=hi) + raw["b2"])
        logits_list.append(jnp.dot(h2, raw["wp"], precision=hi) + raw["bp"])
        values_list.append(jnp.dot(h2, raw["wv"], precision=hi)[:, 0]
                           + raw["bv"][0])
    return jnp.concatenate(logits_list, axis=1), jnp.stack(values_list, axis=1)


if __name__ == "__main__":
    n_agents, obs_size, core_hidden_dim, act_dim, B = 4, 8, 32, 5, 64

    key = jax.random.PRNGKey(0)
    kp, kx = jax.random.split(key)
    params, raw = init_params(kp, n_agents, obs_size, core_hidden_dim, act_dim)
    obs_flat = jax.random.normal(kx, (B, n_agents * obs_size), jnp.float32)

    # block_rows=16 -> grid=(4,): exercises the pipelined / parallel batch axis
    fwd = jax.jit(policy_joippo_forward, static_argnums=(2, 3, 4, 5))
    logits, values = fwd(obs_flat, params, n_agents, obs_size, act_dim, 16)
    jax.block_until_ready((logits, values))

    assert logits.shape == (B, n_agents * act_dim), logits.shape
    assert values.shape == (B, n_agents), values.shape
    assert bool(jnp.all(jnp.isfinite(logits))) and bool(jnp.all(jnp.isfinite(values)))

    ref_logits, ref_values = reference_forward(obs_flat, raw, n_agents, obs_size)
    assert jnp.allclose(logits, ref_logits, atol=2e-2, rtol=2e-2), float(
        jnp.max(jnp.abs(logits - ref_logits)))
    assert jnp.allclose(values, ref_values, atol=2e-2, rtol=2e-2), float(
        jnp.max(jnp.abs(values - ref_values)))

    print("KERNEL_OK")
</pallas_src>

<mosaic_0001>
module attributes {stable_mosaic.version = 11 : i64} {
  func.func @_fused_policy_kernel(%arg0: i32, %arg1: memref<16x32xf32, #tpu.memory_space<vmem>>, %arg2: memref<5x128xf32, #tpu.memory_space<vmem>>, %arg3: memref<32x128xbf16, #tpu.memory_space<vmem>>, %arg4: memref<32x128xbf16, #tpu.memory_space<vmem>>, %arg5: memref<128x128xbf16, #tpu.memory_space<vmem>>, %arg6: memref<128x24xbf16, #tpu.memory_space<vmem>>, %arg7: memref<16x24xf32, #tpu.memory_space<vmem>>) attributes {dimension_semantics = [#tpu.dimension_semantics<parallel>], iteration_bounds = array<i64: 4>, scalar_prefetch = 0 : i64, scratch_operands = 0 : i64, tpu.core_type = #tpu.core_type<tc>, window_params = [{transform_indices = @transform_0, window_bounds = array<i64: 16, 32>}, {pipeline_mode = #tpu.pipeline_mode<synchronous>, transform_indices = @transform_1, window_bounds = array<i64: 5, 128>}, {pipeline_mode = #tpu.pipeline_mode<synchronous>, transform_indices = @transform_2, window_bounds = array<i64: 32, 128>}, {pipeline_mode = #tpu.pipeline_mode<synchronous>, transform_indices = @transform_3, window_bounds = array<i64: 32, 128>}, {pipeline_mode = #tpu.pipeline_mode<synchronous>, transform_indices = @transform_4, window_bounds = array<i64: 128, 128>}, {pipeline_mode = #tpu.pipeline_mode<synchronous>, transform_indices = @transform_5, window_bounds = array<i64: 128, 24>}, {transform_indices = @transform_6, window_bounds = array<i64: 16, 24>}]} {
    %c0 = arith.constant 0 : index
    %c0_0 = arith.constant 0 : index
    %0 = vector.load %arg1[%c0, %c0_0] : memref<16x32xf32, #tpu.memory_space<vmem>>, vector<16x32xf32>
    %c0_1 = arith.constant 0 : index
    %c0_2 = arith.constant 0 : index
    %1 = vector.load %arg2[%c0_1, %c0_2] : memref<5x128xf32, #tpu.memory_space<vmem>>, vector<1x32xf32>
    %c1 = arith.constant 1 : index
    %c0_3 = arith.constant 0 : index
    %2 = vector.load %arg2[%c1, %c0_3] : memref<5x128xf32, #tpu.memory_space<vmem>>, vector<1x32xf32>
    %c2 = arith.constant 2 : index
    %c0_4 = arith.constant 0 : index
    %3 = vector.load %arg2[%c2, %c0_4] : memref<5x128xf32, #tpu.memory_space<vmem>>, vector<1x128xf32>
    %c3 = arith.constant 3 : index
    %c0_5 = arith.constant 0 : index
    %4 = vector.load %arg2[%c3, %c0_5] : memref<5x128xf32, #tpu.memory_space<vmem>>, vector<1x128xf32>
    %c4 = arith.constant 4 : index
    %c0_6 = arith.constant 0 : index
    %5 = vector.load %arg2[%c4, %c0_6] : memref<5x128xf32, #tpu.memory_space<vmem>>, vector<1x24xf32>
    %6 = vector.broadcast %1 : vector<1x32xf32> to vector<16x32xf32>
    %7 = arith.subf %0, %6 : vector<16x32xf32>
    %8 = vector.broadcast %2 : vector<1x32xf32> to vector<16x32xf32>
    %9 = arith.mulf %7, %8 : vector<16x32xf32>
    %10 = tpu.weird %9 : vector<16x32xf32> -> vector<16x32xi1>
    %cst = arith.constant dense<true> : vector<16x32xi1>
    %11 = arith.xori %10, %cst : vector<16x32xi1>
    %cst_7 = arith.constant 0.000000e+00 : f32
    %12 = vector.broadcast %cst_7 : f32 to vector<16x32xf32>
    %13 = arith.select %11, %9, %12 : vector<16x32xi1>, vector<16x32xf32>
    %14 = arith.truncf %13 : vector<16x32xf32> to vector<16x32xbf16>
    %c0_8 = arith.constant 0 : index
    %c0_9 = arith.constant 0 : index
    %15 = vector.load %arg3[%c0_8, %c0_9] : memref<32x128xbf16, #tpu.memory_space<vmem>>, vector<32x128xbf16>
    %cst_10 = arith.constant dense<0.000000e+00> : vector<16x128xf32>
    %16 = tpu.matmul %14, %15, %cst_10 {dimension_numbers = #tpu.dot_dimension_numbers<[1], [0], [0], [1], [0, 0, 1, 1], [], []>} : vector<16x32xbf16>, vector<32x128xbf16>, vector<16x128xf32> -> vector<16x128xf32>
    %17 = arith.truncf %0 : vector<16x32xf32> to vector<16x32xbf16>
    %c0_11 = arith.constant 0 : index
    %c0_12 = arith.constant 0 : index
    %18 = vector.load %arg4[%c0_11, %c0_12] : memref<32x128xbf16, #tpu.memory_space<vmem>>, vector<32x128xbf16>
    %cst_13 = arith.constant dense<0.000000e+00> : vector<16x128xf32>
    %19 = tpu.matmul %17, %18, %cst_13 {dimension_numbers = #tpu.dot_dimension_numbers<[1], [0], [0], [1], [0, 0, 1, 1], [], []>} : vector<16x32xbf16>, vector<32x128xbf16>, vector<16x128xf32> -> vector<16x128xf32>
    %20 = arith.addf %16, %19 : vector<16x128xf32>
    %21 = vector.broadcast %3 : vector<1x128xf32> to vector<16x128xf32>
    %22 = arith.addf %20, %21 : vector<16x128xf32>
    %23 = math.tanh %22 : vector<16x128xf32>
    %24 = arith.truncf %23 : vector<16x128xf32> to vector<16x128xbf16>
    %c0_14 = arith.constant 0 : index
    %c0_15 = arith.constant 0 : index
    %25 = vector.load %arg5[%c0_14, %c0_15] : memref<128x128xbf16, #tpu.memory_space<vmem>>, vector<128x128xbf16>
    %cst_16 = arith.constant dense<0.000000e+00> : vector<16x128xf32>
    %26 = tpu.matmul %24, %25, %cst_16 {dimension_numbers = #tpu.dot_dimension_numbers<[1], [0], [0], [1], [0, 0, 1, 1], [], []>} : vector<16x128xbf16>, vector<128x128xbf16>, vector<16x128xf32> -> vector<16x128xf32>
    %27 = vector.broadcast %4 : vector<1x128xf32> to vector<16x128xf32>
    %28 = arith.addf %26, %27 : vector<16x128xf32>
    %29 = math.tanh %28 : vector<16x128xf32>
    %30 = arith.truncf %29 : vector<16x128xf32> to vector<16x128xbf16>
    %c0_17 = arith.constant 0 : index
    %c0_18 = arith.constant 0 : index
    %31 = vector.load %arg6[%c0_17, %c0_18] : memref<128x24xbf16, #tpu.memory_space<vmem>>, vector<128x24xbf16>
    %cst_19 = arith.constant dense<0.000000e+00> : vector<16x24xf32>
    %32 = tpu.matmul %30, %31, %cst_19 {dimension_numbers = #tpu.dot_dimension_numbers<[1], [0], [0], [1], [0, 0, 1, 1], [], []>} : vector<16x128xbf16>, vector<128x24xbf16>, vector<16x24xf32> -> vector<16x24xf32>
    %33 = vector.broadcast %5 : vector<1x24xf32> to vector<16x24xf32>
    %34 = arith.addf %32, %33 : vector<16x24xf32>
    %c0_20 = arith.constant 0 : index
    %c0_21 = arith.constant 0 : index
    %35 = vector.load %arg7[%c0_20, %c0_21] : memref<16x24xf32, #tpu.memory_space<vmem>>, vector<16x24xf32>
    tpu.vector_store %arg7[%c0_20, %c0_21], %34 {strides = array<i32>} : memref<16x24xf32, #tpu.memory_space<vmem>>, vector<16x24xf32>,
    return
  }
  func.func @transform_0(%arg0: i32) -> (i32, i32) {
    %c0_i32 = arith.constant 0 : i32
    %c0_i32_0 = arith.constant 0 : i32
    return %arg0, %c0_i32 : i32, i32
  }
  func.func @transform_1(%arg0: i32) -> (i32, i32) {
    %c0_i32 = arith.constant 0 : i32
    %c0_i32_0 = arith.constant 0 : i32
    %c0_i32_1 = arith.constant 0 : i32
    return %c0_i32, %c0_i32_0 : i32, i32
  }
  func.func @transform_2(%arg0: i32) -> (i32, i32) {
    %c0_i32 = arith.constant 0 : i32
    %c0_i32_0 = arith.constant 0 : i32
    %c0_i32_1 = arith.constant 0 : i32
    return %c0_i32, %c0_i32_0 : i32, i32
  }
  func.func @transform_3(%arg0: i32) -> (i32, i32) {
    %c0_i32 = arith.constant 0 : i32
    %c0_i32_0 = arith.constant 0 : i32
    %c0_i32_1 = arith.constant 0 : i32
    return %c0_i32, %c0_i32_0 : i32, i32
  }
  func.func @transform_4(%arg0: i32) -> (i32, i32) {
    %c0_i32 = arith.constant 0 : i32
    %c0_i32_0 = arith.constant 0 : i32
    %c0_i32_1 = arith.constant 0 : i32
    return %c0_i32, %c0_i32_0 : i32, i32
  }
  func.func @transform_5(%arg0: i32) -> (i32, i32) {
    %c0_i32 = arith.constant 0 : i32
    %c0_i32_0 = arith.constant 0 : i32
    %c0_i32_1 = arith.constant 0 : i32
    return %c0_i32, %c0_i32_0 : i32, i32
  }
  func.func @transform_6(%arg0: i32) -> (i32, i32) {
    %c0_i32 = arith.constant 0 : i32
    %c0_i32_0 = arith.constant 0 : i32
    return %arg0, %c0_i32 : i32, i32
  }
}

</mosaic_0001>

<bundles_post_ra>
// kernel: policy_joippo_forward.1
= control target key start
LH: loop header
LB: loop body
LE: loop exit
PB: predicated region body
PF: predicated region fallthrough
CT: control target
= control target key end

     0   :  { %s749_s21 = smov 0   ;;  %s850_s0 = inlined_call_operand.vmem [shape: f32[64,32], index: 0, kind: input, shape index: {}]   ;;  %s851_s1 = inlined_call_operand.vmem [shape: f32[5,128], index: 1, kind: input, shape index: {}]   ;;  %s852_s2 = inlined_call_operand.vmem [shape: bf16[32,128], index: 2, kind: input, shape index: {}]   ;;  %s853_s3 = inlined_call_operand.vmem [shape: bf16[32,128], index: 3, kind: input, shape index: {}]   ;;  %s854_s4 = inlined_call_operand.vmem [shape: bf16[128,128], index: 4, kind: input, shape index: {}]   ;;  %s855_s5 = inlined_call_operand.vmem [shape: bf16[128,24], index: 5, kind: input, shape index: {}]   ;;  %s856_s6 = inlined_call_operand.vmem [shape: f32[64,24], index: 6, kind: output, shape index: {}]  }
   0x1 LB: > { %s570_s22 = sadd.s32 4294967295, %s711_s21   ;;  %p574_p0 = scmp.ge.s32.totalorder %s711_s21, 1  ;;  %s711_s21 = sphi %s749_s21, %s16_s21  }
   0x2   : > { %p213_p1 = scmp.lt.s32.totalorder %s711_s21, 5 }
   0x4   : > { %p214_p2 = pnand %p574_p0, %p213_p1 }
   0x5   : > { %s575_s25 = sshll.u32 (!%p214_p2), %s570_s22, 1 }
   0x6   : > { %217 = sbr.rel (%p214_p2) target bundleno = 466 (0x1d2), region = 44  ;;  %p244_p3 = scmp.lt.s32.totalorder (!%p214_p2), %s575_s25, 7 }
   0xb   : > { %v666_v0 = vld [vmem:[%s853_s3 + $0x8] sm:$0xff]  ;;  %v665_v2 = vld [vmem:[%s853_s3] sm:$0xff]  ;;  %v674_v3 = vld [vmem:[%s854_s4 + $0x38] sm:$0xff]  ;;  %s858_s25 = smov (!%p244_p3, %s575_s25), 7  ;;  %vm297_vm0 = vcmask 261120   ;;  %vm713_vm3 = vmmov 1  }
   0xc   : > { %v664_v1 = vld [vmem:[%s852_s2 + $0x8] sm:$0xff]  ;;  %307 = vmatpush.bf16.msra.mxu0 %v666_v0  ;;  %v663_v4 = vld [vmem:[%s852_s2] sm:$0xff]  ;;  %415 = vmatpush.bf16.msra.mxu2 %v674_v3  ;;  %s576_s12 = sshll.u32 %s858_s25, 3  ;;  %v673_v17 = vld [vmem:[%s854_s4 + $0x30] sm:$0xff]  ;;  %vm511_vm6 = vcmask 195584  }
   0xd   : > { %336 = vmatpush.bf16.msra.mxu1 %v664_v1  ;;  %v692_v5 = vld [vmem:[%s851_s1] ss:$0 sm:$0xff]  ;;  %s247_s15 = scalar_lea.vmem %s850_s0, %s576_s12  ;;  %v693_v6 = vld [vmem:[%s851_s1 + $0x1] ss:$0 sm:$0xff]  ;;  %v672_v18 = vld [vmem:[%s854_s4 + $0x28] sm:$0xff]  ;;  %s253_s14 = scalar_lea.vmem %s856_s6, %s576_s12 }
   0xe   : > { %v256_v7 = vld [vmem:[%s247_s15] sm:$0xff]  ;;  %v257_v8 = vld [vmem:[%s247_s15 + $0x8] sm:$0xff]  ;;  %v670_v20 = vld [vmem:[%s854_s4 + $0x18] sm:$0xff] }
   0xf   : > { %v264_v9 = vsub.f32 %v256_v7, %v692_v5  ;;  %v265_v10 = vsub.f32 %v257_v8, %v692_v5  ;;  %v280_v11 = vpack.c.bf16 %v257_v8, %v256_v7  ;;  %v671_v19 = vld [vmem:[%s854_s4 + $0x20] sm:$0xff]  ;;  %v669_v21 = vld [vmem:[%s854_s4 + $0x10] sm:$0xff]  ;;  %v668_v22 = vld [vmem:[%s854_s4 + $0x8] sm:$0xff] }
  0x10   : > { %308 = vmatpush.bf16.msra.mxu0 %v665_v2  ;;  %416 = vmatpush.bf16.msra.mxu2 %v673_v17  ;;  %v667_v23 = vld [vmem:[%s854_s4] sm:$0xff]  ;;  %v682_v24 = vld [vmem:[%s855_s5 + $0x38] sm:$0xff]  ;;  %v681_v25 = vld [vmem:[%s855_s5 + $0x30] sm:$0xff] }
  0x11   : > { %337 = vmatpush.bf16.msra.mxu1 %v663_v4  ;;  %v267_v12 = vmul.f32 %v693_v6, %v264_v9  ;;  %v268_v13 = vmul.f32 %v693_v6, %v265_v10  ;;  %497 = vmatpush.bf16.msra.mxu3 %v682_v24  ;;  %v680_v26 = vld [vmem:[%s855_s5 + $0x28] sm:$0xff]  ;;  %v694_v30 = vld [vmem:[%s851_s1 + $0x2] ss:$0 sm:$0xff]  ;;  %v678_v40 = vld [vmem:[%s855_s5 + $0x18] sm:$0xff] }
  0x12   : > { %v679_v39 = vld [vmem:[%s855_s5 + $0x20] sm:$0xff]  ;;  %v677_v41 = vld [vmem:[%s855_s5 + $0x10] sm:$0xff]  ;;  %v676_v42 = vld [vmem:[%s855_s5 + $0x8] sm:$0xff] }
  0x13   : > { %587 = vmatmul.msk.bf16.vlgmr.msra.gmra.mxu0 %vm297_vm0, %v280_v11  ;;  %vm269_vm1 = vweird.f32 %v267_v12  ;;  %vm270_vm2 = vweird.f32 %v268_v13  ;;  %v675_v43 = vld [vmem:[%s855_s5] sm:$0xff] }
  0x14   : > { %vm271_vm4 = vmxor %vm269_vm1, %vm713_vm3  ;;  %417 = vmatpush.bf16.msra.mxu2 %v672_v18  ;;  %v695_v45 = vld [vmem:[%s851_s1 + $0x3] ss:$0 sm:$0xff]  ;;  %v696_v52 = vld [vmem:[%s851_s1 + $0x4] ss:$0 sm:$0xff] }
  0x15   : > { %vm272_vm5 = vmxor %vm270_vm2, %vm713_vm3  ;;  %v273_v14 = vsel %vm271_vm4, %v267_v12, 0.0  ;;  %498 = vmatpush.bf16.msra.mxu3 %v681_v25 }
  0x16   : > { %v274_v15 = vsel %vm272_vm5, %v268_v13, 0.0 }
  0x17   : > { %v275_v16 = vpack.c.bf16 %v274_v15, %v273_v14 }
  0x18   : > { %418 = vmatpush.bf16.msra.mxu2 %v671_v19 }
  0x19   : > { %596 = vmatmul.msk.bf16.vlgmr.msra.gmra.mxu1 %vm297_vm0, %v275_v16  ;;  %499 = vmatpush.bf16.msra.mxu3 %v680_v26 }
  0x1c   : > { %419 = vmatpush.bf16.msra.mxu2 %v670_v20 }
  0x1d   : > { %500 = vmatpush.bf16.msra.mxu3 %v679_v39 }
  0x20   : > { %420 = vmatpush.bf16.msra.mxu2 %v669_v21 }
  0x21   : > { %501 = vmatpush.bf16.msra.mxu3 %v678_v40 }
  0x24   : > { %421 = vmatpush.bf16.msra.mxu2 %v668_v22 }
  0x25   : > { %502 = vmatpush.bf16.msra.mxu3 %v677_v41 }
  0x28   : > { %422 = vmatpush.bf16.msra.mxu2 %v667_v23 }
  0x29   : > { %503 = vmatpush.bf16.msra.mxu3 %v676_v42 }
  0x2d   : > { %504 = vmatpush.bf16.msra.mxu3 %v675_v43 }
  0x90   : > { %v310_v27 = vpop.f32.mrf.mxu0 }
  0x96   : > { %v339_v28 = vpop.f32.mrf.mxu1 }
  0x97   : > { %v340_v29 = vadd.f32 %v339_v28, %v310_v27 }
  0x98   : > { %v312_v32 = vpop.f32.mrf.mxu0 }
  0x99   : > { %v345_v31 = vadd.f32 %v694_v30, %v340_v29 }
  0x9b   : > { %697 = vtanh.f32 %v345_v31 }
  0x9e   : > { %v341_v33 = vpop.f32.mrf.mxu1 }
  0x9f   : > { %v342_v34 = vadd.f32 %v341_v33, %v312_v32 }
  0xa1   : > { %v346_v35 = vadd.f32 %v694_v30, %v342_v34  ;;  %v698_v36 = vpop.eup %697 }
  0xa3   : > { %699 = vtanh.f32 %v346_v35 }
  0xa9   : > { %v700_v37 = vpop.eup %699 }
  0xaa   : > { %v349_v38 = vpack.c.bf16 %v700_v37, %v698_v36 }
  0xac   : > { %423 = vmatmul.bf16.vlgmr.msra.gmra.mxu2 %v349_v38 }
 0x12f   : > { %v424_v44 = vpop.f32.mrf.mxu2 }
 0x130   : > { %v425_v46 = vadd.f32 %v695_v45, %v424_v44 }
 0x132   : > { %701 = vtanh.f32 %v425_v46 }
 0x137   : > { %v426_v47 = vpop.f32.mrf.mxu2 }
 0x138   : > { %v427_v48 = vadd.f32 %v695_v45, %v426_v47  ;;  %v702_v49 = vpop.eup %701 }
 0x13a   : > { %703 = vtanh.f32 %v427_v48 }
 0x140   : > { %v704_v50 = vpop.eup %703 }
 0x141   : > { %v431_v51 = vpack.c.bf16 %v704_v50, %v702_v49 }
 0x143   : > { %505 = vmatmul.bf16.vlgmr.msra.gmra.mxu3 %v431_v51 }
 0x1c6   : > { %v506_v53 = vpop.f32.mrf.mxu3 }
 0x1c7   : > { %v507_v54 = vadd.f32 %v696_v52, %v506_v53 }
 0x1c9   : > { %512 = vst.msk [vmem:[%s253_s14] sm:$0xff] %vm511_vm6, %v507_v54 }
 0x1ce   : > { %v508_v55 = vpop.f32.mrf.mxu3 }
 0x1cf   : > { %v509_v56 = vadd.f32 %v696_v52, %v508_v55 }
 0x1d1   : > { %513 = vst.msk [vmem:[%s253_s14 + $0x8] sm:$0xff] %vm511_vm6, %v509_v56 }
 0x1d2 PF: > { %s16_s21 = sadd.s32 1, %s711_s21  }
 0x1d3   : > { %p13_p4 = scmp.ge.s32.totalorder %s16_s21, 6  }
 0x1d5   :  { %15 = sbr.rel (!%p13_p4) target bundleno = 1 (0x1), region = 74 }

</bundles_post_ra>
